<compile_context>
chip_gen: v5e
topology: v5e:2x2
jax: 0.10.0
libtpu: 0.0.40
codegen_flags: <defaults>
</compile_context>

<pallas_src>
import functools
import math

import jax
import jax.numpy as jnp
from jax.experimental import pallas as pl
from jax.experimental.pallas import tpu as pltpu

_LANES = 128
_SUBLANES = 8
# Per-operand element budget per grid step: 256K elems = 1 MiB f32 block.
_BLOCK_ELEMS = 256 * 1024
# Below this many gt elements, a fused XLA expression beats the pallas_call overhead.
_MIN_PALLAS_ELEMS = 256 * 1024


def _mvg_nll_partial_kernel(mu_ref, ls_ref, gt_ref, out_ref, *, valid_rows):
    """Per-tile partial sums of 0.5*(gt-mu)^2*exp(-2*ls) + ls.

    mu_ref / ls_ref / gt_ref: (rows, cols) blocks in the input dtype.
    out_ref: (1, 8, cols) f32 partial-sum block for this grid step.
    """
    mu = mu_ref[...].astype(jnp.float32)
    ls = ls_ref[...].astype(jnp.float32)
    gt = gt_ref[...].astype(jnp.float32)

    diff = gt - mu
    # Fused per-element term: 0.5 * ((gt - mu) / exp(logsigma))**2 + logsigma
    t = 0.5 * diff * diff * jnp.exp(-2.0 * ls) + ls

    rows, cols = t.shape
    # Ragged last row-tile: rows past `valid_rows` hold unspecified data -> zero them.
    # (On the slab path all rows are valid; this folds to a no-op select.)
    row_ids = pl.program_id(0) * rows + jax.lax.broadcasted_iota(
        jnp.int32, (rows, cols), 0)
    t = jnp.where(row_ids < valid_rows, t, 0.0)

    # (rows, cols) -> (rows//8, 8, cols): sublane groups map 1:1 onto physical
    # (8, 128) tiles, so this reshape is layout-preserving and the axis-0 reduce is
    # pure per-lane VPU adds (no XLU cross-lane work inside the kernel).
    out_ref[0] = jnp.sum(t.reshape(rows // _SUBLANES, _SUBLANES, cols), axis=0)


def _row_tiling(total_rows, elems_per_row):
    """Pick (tile_rows, n_blocks) for a 1-D row grid.

    tile_rows is a multiple of 8, each operand block stays <= _BLOCK_ELEMS elements,
    and we force >= 2 (ideally >= 4) grid steps when there are enough rows so the
    "parallel" grid axis can shard across the two TensorCores on v7x.
    Assumes total_rows >= 8.
    """
    max_rows = max(
        _SUBLANES,
        (_BLOCK_ELEMS // max(1, elems_per_row)) // _SUBLANES * _SUBLANES)
    tile = max(_SUBLANES, min(max_rows, total_rows // _SUBLANES * _SUBLANES))
    if total_rows >= 4 * _SUBLANES:
        min_blocks = 4
    elif total_rows >= 2 * _SUBLANES:
        min_blocks = 2
    else:
        min_blocks = 1
    if pl.cdiv(total_rows, tile) < min_blocks:
        tile = max(_SUBLANES,
                   pl.cdiv(pl.cdiv(total_rows, min_blocks), _SUBLANES) * _SUBLANES)
    return tile, pl.cdiv(total_rows, tile)


def _call_partial_kernel(operands, in_specs, n_blocks, cols, *, valid_rows,
                         n_elems, bytes_accessed):
    kernel = functools.partial(_mvg_nll_partial_kernel, valid_rows=valid_rows)
    cost = pl.CostEstimate(flops=8 * n_elems, transcendentals=n_elems,
                           bytes_accessed=int(bytes_accessed))
    return pl.pallas_call(
        kernel,
        out_shape=jax.ShapeDtypeStruct((n_blocks, _SUBLANES, cols), jnp.float32),
        grid=(n_blocks,),
        in_specs=list(in_specs),
        out_specs=pl.BlockSpec((1, _SUBLANES, cols), lambda i: (i, 0, 0)),
        compiler_params=pltpu.CompilerParams(dimension_semantics=("parallel",)),
        cost_estimate=cost,
    )(*operands)


def _partials_direct(pred, gt, B, D):
    """Lane-aligned D: tile (B, 2D)/(B, D) directly — no wrapper copies at all."""
    tile_b, n_blocks = _row_tiling(B, D)
    in_specs = [
        pl.BlockSpec((tile_b, D), lambda i: (i, 0)),   # mu       = pred[:, :D]
        pl.BlockSpec((tile_b, D), lambda i: (i, 1)),   # logsigma = pred[:, D:]
        pl.BlockSpec((tile_b, D), lambda i: (i, 0)),   # gt
    ]
    n = B * D
    bytes_accessed = (2 * n * pred.dtype.itemsize + n * gt.dtype.itemsize
                      + n_blocks * _SUBLANES * D * 4)
    return _call_partial_kernel(
        (pred, pred, gt), in_specs, n_blocks, D,
        valid_rows=B, n_elems=n, bytes_accessed=bytes_accessed)


def _partials_slab(pred, gt, B, D):
    """Lane-unaligned D fallback: pack into lane-dense [rows, 128] slabs.

    Zero padding contributes exactly 0 to the sum (diff = 0, logsigma = 0), so the
    1/B normalization stays exact.
    """
    mu = pred[:, :D]
    logsigma = pred[:, D:]
    n = B * D
    rows = pl.cdiv(pl.cdiv(n, _LANES), _SUBLANES) * _SUBLANES
    tile_rows, n_blocks = _row_tiling(rows, _LANES)
    padded = n_blocks * tile_rows * _LANES

    def to_slab(x):
        flat = x.reshape(-1)
        flat = jnp.pad(flat, (0, padded - n))
        return flat.reshape(n_blocks * tile_rows, _LANES)

    mu_s, ls_s, gt_s = to_slab(mu), to_slab(logsigma), to_slab(gt)
    in_specs = [pl.BlockSpec((tile_rows, _LANES), lambda i: (i, 0)) for _ in range(3)]
    bytes_accessed = (padded * (2 * mu_s.dtype.itemsize + gt_s.dtype.itemsize)
                      + n_blocks * _SUBLANES * _LANES * 4)
    return _call_partial_kernel(
        (mu_s, ls_s, gt_s), in_specs, n_blocks, _LANES,
        valid_rows=n_blocks * tile_rows, n_elems=padded,
        bytes_accessed=bytes_accessed)


def mvg_nll_loss(pred: jax.Array, gt: jax.Array, *, use_pallas=None) -> jax.Array:
    """Pallas implementation of MultivariateGaussianNegativeLogLikelihood.forward.

    use_pallas: None = auto (size-based dispatch), True/False = force path.
    """
    assert pred.ndim == 2 and gt.ndim == 2
    assert pred.shape[1] % 2 == 0, "pred columns must be even (mu | logsigma)"
    B, two_d = pred.shape
    D = two_d // 2
    assert gt.shape == (B, D)

    log2pi = 0.5 * D * math.log(2.0 * math.pi)

    if use_pallas is None:
        use_pallas = B * D >= _MIN_PALLAS_ELEMS
    if not use_pallas:
        # Tiny-input path: fixed pallas_call overhead dominates; let XLA fuse it.
        mu = pred[:, :D].astype(jnp.float32)
        ls = pred[:, D:].astype(jnp.float32)
        g = gt.astype(jnp.float32)
        t = 0.5 * jnp.square((g - mu) * jnp.exp(-ls)) + ls
        return jnp.sum(t) / B + jnp.float32(log2pi)

    if D % _LANES == 0 and B >= _SUBLANES:
        partials = _partials_direct(pred, gt, B, D)
    else:
        partials = _partials_slab(pred, gt, B, D)
    return jnp.sum(partials) / B + jnp.float32(log2pi)


def mvg_nll_loss_ref(pred, gt):
    D = pred.shape[1] // 2
    mu = pred[:, :D]
    logsigma = pred[:, D:]
    mse = -0.5 * jnp.sum(jnp.square((gt - mu) / jnp.exp(logsigma)), axis=1)
    sigma_trace = -jnp.sum(logsigma, axis=1)
    log2pi = -0.5 * D * math.log(2.0 * math.pi)
    log_likelihood = mse + sigma_trace + log2pi
    return jnp.mean(-log_likelihood)


if __name__ == "__main__":
    key = jax.random.PRNGKey(0)
    k1, k2, k3, k4 = jax.random.split(key, 4)

    # Case 1: small, lane-unaligned D -> exercises the packed-slab kernel path.
    B1, D1 = 8, 32
    pred1 = jax.random.normal(k1, (B1, 2 * D1), dtype=jnp.float32)
    gt1 = jax.random.normal(k2, (B1, D1), dtype=jnp.float32)
    out1 = jax.block_until_ready(mvg_nll_loss(pred1, gt1, use_pallas=True))
    ref1 = jax.block_until_ready(mvg_nll_loss_ref(pred1, gt1))
    assert jnp.allclose(out1, ref1, rtol=1e-5, atol=1e-5), (out1, ref1)

    # Case 2: lane-aligned D, non-multiple-of-tile batch -> exercises the direct
    # (copy-free) tiling path with a ragged, masked last row-tile and >= 2 grid steps.
    B2, D2 = 36, 128
    pred2 = jax.random.normal(k3, (B2, 2 * D2), dtype=jnp.float32)
    gt2 = jax.random.normal(k4, (B2, D2), dtype=jnp.float32)
    out2 = jax.block_until_ready(mvg_nll_loss(pred2, gt2, use_pallas=True))
    ref2 = jax.block_until_ready(mvg_nll_loss_ref(pred2, gt2))
    assert jnp.allclose(out2, ref2, rtol=1e-5, atol=1e-5), (out2, ref2)

    # Auto-dispatch sanity check (tiny input -> fused XLA path).
    out3 = jax.block_until_ready(mvg_nll_loss(pred1, gt1))
    assert jnp.allclose(out3, ref1, rtol=1e-5, atol=1e-5), (out3, ref1)

    print("KERNEL_OK")
</pallas_src>

<mosaic_0001>
module attributes {stable_mosaic.version = 11 : i64} {
  func.func @_mvg_nll_partial_kernel(%arg0: i32, %arg1: memref<8x128xf32, #tpu.memory_space<vmem>>, %arg2: memref<8x128xf32, #tpu.memory_space<vmem>>, %arg3: memref<8x128xf32, #tpu.memory_space<vmem>>, %arg4: memref<1x8x128xf32, #tpu.memory_space<vmem>>) attributes {dimension_semantics = [#tpu.dimension_semantics<parallel>], iteration_bounds = array<i64: 1>, scalar_prefetch = 0 : i64, scratch_operands = 0 : i64, tpu.core_type = #tpu.core_type<tc>, window_params = [{transform_indices = @transform_0, window_bounds = array<i64: 8, 128>}, {transform_indices = @transform_1, window_bounds = array<i64: 8, 128>}, {transform_indices = @transform_2, window_bounds = array<i64: 8, 128>}, {transform_indices = @transform_3, window_bounds = array<i64: 1, 8, 128>}]} {
    %c0 = arith.constant 0 : index
    %c0_0 = arith.constant 0 : index
    %0 = vector.load %arg1[%c0, %c0_0] : memref<8x128xf32, #tpu.memory_space<vmem>>, vector<8x128xf32>
    %c0_1 = arith.constant 0 : index
    %c0_2 = arith.constant 0 : index
    %1 = vector.load %arg2[%c0_1, %c0_2] : memref<8x128xf32, #tpu.memory_space<vmem>>, vector<8x128xf32>
    %c0_3 = arith.constant 0 : index
    %c0_4 = arith.constant 0 : index
    %2 = vector.load %arg3[%c0_3, %c0_4] : memref<8x128xf32, #tpu.memory_space<vmem>>, vector<8x128xf32>
    %3 = arith.subf %2, %0 : vector<8x128xf32>
    %cst = arith.constant 5.000000e-01 : f32
    %4 = vector.broadcast %cst : f32 to vector<8x128xf32>
    %5 = arith.mulf %4, %3 : vector<8x128xf32>
    %6 = arith.mulf %5, %3 : vector<8x128xf32>
    %cst_5 = arith.constant -2.000000e+00 : f32
    %7 = vector.broadcast %cst_5 : f32 to vector<8x128xf32>
    %8 = arith.mulf %7, %1 : vector<8x128xf32>
    %9 = math.exp %8 : vector<8x128xf32>
    %10 = arith.mulf %6, %9 : vector<8x128xf32>
    %11 = arith.addf %10, %1 : vector<8x128xf32>
    %c8_i32 = arith.constant 8 : i32
    %12 = arith.muli %arg0, %c8_i32 : i32
    %13 = tpu.iota {dimensions = array<i32: 0>} : vector<8x128xi32>
    %14 = vector.broadcast %12 : i32 to vector<8x128xi32>
    %15 = arith.addi %14, %13 : vector<8x128xi32>
    %c8_i32_6 = arith.constant 8 : i32
    %16 = vector.broadcast %c8_i32_6 : i32 to vector<8x128xi32>
    %17 = arith.cmpi slt, %15, %16 : vector<8x128xi32>
    %cst_7 = arith.constant 0.000000e+00 : f32
    %18 = vector.broadcast %cst_7 : f32 to vector<8x128xf32>
    %19 = arith.select %17, %11, %18 : vector<8x128xi1>, vector<8x128xf32>
    %20 = vector.shape_cast %19 : vector<8x128xf32> to vector<1x8x128xf32>
    %cst_8 = arith.constant dense<0.000000e+00> : vector<8x128xf32>
    %21 = vector.multi_reduction <add>, %20, %cst_8 [0] : vector<1x8x128xf32> to vector<8x128xf32>
    %c0_9 = arith.constant 0 : index
    %c0_10 = arith.constant 0 : index
    %c0_11 = arith.constant 0 : index
    %22 = vector.load %arg4[%c0_9, %c0_10, %c0_11] : memref<1x8x128xf32, #tpu.memory_space<vmem>>, vector<1x8x128xf32>
    %23 = vector.shape_cast %22 : vector<1x8x128xf32> to vector<8x128xf32>
    %24 = vector.shape_cast %21 : vector<8x128xf32> to vector<1x8x128xf32>
    tpu.vector_store %arg4[%c0_9, %c0_10, %c0_11], %24 {strides = array<i32>} : memref<1x8x128xf32, #tpu.memory_space<vmem>>, vector<1x8x128xf32>,
    return
  }
  func.func @transform_0(%arg0: i32) -> (i32, i32) {
    %c0_i32 = arith.constant 0 : i32
    %c0_i32_0 = arith.constant 0 : i32
    return %arg0, %c0_i32 : i32, i32
  }
  func.func @transform_1(%arg0: i32) -> (i32, i32) {
    %c0_i32 = arith.constant 0 : i32
    %c0_i32_0 = arith.constant 0 : i32
    return %arg0, %c0_i32 : i32, i32
  }
  func.func @transform_2(%arg0: i32) -> (i32, i32) {
    %c0_i32 = arith.constant 0 : i32
    %c0_i32_0 = arith.constant 0 : i32
    return %arg0, %c0_i32 : i32, i32
  }
  func.func @transform_3(%arg0: i32) -> (i32, i32, i32) {
    %c0_i32 = arith.constant 0 : i32
    %c0_i32_0 = arith.constant 0 : i32
    %c0_i32_1 = arith.constant 0 : i32
    return %arg0, %c0_i32, %c0_i32_0 : i32, i32, i32
  }
}

</mosaic_0001>

<bundles_post_ra>
// kernel: tpu_custom_call.1
= control target key start
LH: loop header
LB: loop body
LE: loop exit
PB: predicated region body
PF: predicated region fallthrough
CT: control target
= control target key end

     0   :  { %8 = vsyncpa [#allocation3], 0  ;;  %s238_s0 = inlined_call_operand.hbm [shape: f32[8,128], index: 0, kind: input, shape index: {}]   ;;  %s239_s1 = inlined_call_operand.hbm [shape: f32[8,128], index: 1, kind: input, shape index: {}]   ;;  %s240_s2 = inlined_call_operand.hbm [shape: f32[8,128], index: 2, kind: input, shape index: {}]   ;;  %s241_s3 = inlined_call_operand.hbm [shape: f32[1,8,128], index: 3, kind: output, shape index: {}]  }
   0x1   :  { %9 = vsyncpa [#allocation6], 0  ;;  %s27_s14 = sshll.u32 %s239_s1, 4  ;;  %s28_s14 = int_to_ptr.hbm [resolvable:$true] %s27_s14 }
   0x2   :  { %10 = vsyncpa [#allocation4], 0  ;;  %s202_s15 = smov [#allocation5]   ;;  %s16_s19 = sshll.u32 %s238_s0, 4  ;;  %s17_s19 = int_to_ptr.hbm [resolvable:$true] %s16_s19 }
   0x3   :  { %s29_s16 = sshll.u32 %s202_s15, 4  ;;  %s203_s20 = smov [#allocation2]   ;;  %s30_s16 = int_to_ptr.vmem [resolvable:$true] %s29_s16 }
   0x4   :  { %32 = dma.hbm_to_vmem [thread:$0]  %s28_s14, 128, %s30_s16, [#allocation6]  }
   0x5   :  { %s18_s21 = sshll.u32 %s203_s20, 4  ;;  %s38_s24 = sshll.u32 %s240_s2, 4  ;;  %s19_s21 = int_to_ptr.vmem [resolvable:$true] %s18_s21  ;;  %s39_s24 = int_to_ptr.hbm [resolvable:$true] %s38_s24 }
   0x6   :  { %21 = dma.hbm_to_vmem [thread:$0]  %s17_s19, 128, %s19_s21, [#allocation3]  }
   0x7   :  { %s204_s1 = smov [#allocation7]  }
   0x8   :  { %s40_s25 = sshll.u32 %s204_s1, 4  ;;  %s41_s25 = int_to_ptr.vmem [resolvable:$true] %s40_s25 }
   0x9   :  { %43 = dma.hbm_to_vmem [thread:$0]  %s39_s24, 128, %s41_s25, [#allocation6]  }
   0xa   :  { %196 = dma.done.wait [#allocation3], 128  }
   0xb   :  { %197 = vsyncadd [#allocation3], 4294967168 }
   0xc   :  { %198 = dma.done.wait [#allocation6], 256  }
   0xd   :  { %199 = vsyncadd [#allocation6], 4294967040  ;;  %v56_v0 = vld [vmem:[#allocation2] sm:$0xff]  ;;  %v57_v1 = vld [vmem:[#allocation5] sm:$0xff]  ;;  %s205_s0 = smov [#allocation8]   ;;  %s83_s28 = sshll.u32 %s241_s3, 4  ;;  %s84_s28 = int_to_ptr.hbm [resolvable:$true] %s83_s28 }
   0xe   :  { %v58_v2 = vld [vmem:[#allocation7] sm:$0xff]  ;;  %v62_v4 = vmul.f32 -2.0, %v57_v1  ;;  %s81_s2 = sshll.u32 %s205_s0, 4  ;;  %s82_s2 = int_to_ptr.vmem [resolvable:$true] %s81_s2 }
   0xf   :  { %v59_v3 = vsub.f32 %v58_v2, %v56_v0 }
  0x10   :  { %v63_v5 = vmul.f32 1.442695, %v62_v4 }
  0x11   :  { %v60_v6 = vmul.f32 0.5, %v59_v3 }
  0x12   :  { %98 = vpow2.f32 %v63_v5 }
  0x13   :  { %v61_v7 = vmul.f32 %v60_v6, %v59_v3 }
  0x18   :  { %v99_v8 = vpop.eup %98 }
  0x19   :  { %v65_v9 = vmul.f32 %v99_v8, %v61_v7 }
  0x1b   :  { %v66_v10 = vadd.f32 %v65_v9, %v57_v1 }
  0x1d   :  { %75 = vst [vmem:[#allocation8] sm:$0xff] %v66_v10 }
  0x1e   :  { %86 = dma.vmem_to_hbm [thread:$0]  %s82_s2, 128, %s84_s28, [#allocation4]  }
  0x1f   :  { %200 = dma.done.wait [#allocation4], 128  }
  0x20   :  { %201 = vsyncadd [#allocation4], 4294967168 }
  0x21   :  { %91 = vsyncpa [#allocation3], 1 }
  0x22   :  { %92 = vsyncpa [#allocation6], 1 }
  0x23   :  { %93 = vsyncpa [#allocation4], 1 }

</bundles_post_ra>
